<compile_context>
chip_gen: v7x
topology: tpu7x:2x2x1
jax: 0.10.0
libtpu: 0.0.40
codegen_flags: <defaults>
</compile_context>

<pallas_src>
import jax
import jax.numpy as jnp
from jax.experimental import pallas as pl
from jax.experimental.pallas import tpu as pltpu

FEAT = 14  # hidden width of DeepModel


def _round_up(x, m):
    return ((x + m - 1) // m) * m


def deep_model_kernel(x_ref, wh_ref, bh_ref, wo_ref, bo_ref, o_ref):
    """One batch tile: x_ref (14, TB) -> o_ref (1, TB); batch on the lane axis."""
    cdt = x_ref.dtype
    h = x_ref[...]                                   # (14, TB)

    # Three hidden Linear(14,14) + ReLU layers (weights [out, in], bias (14,1)).
    for layer in range(3):
        w = wh_ref[layer]                            # (14, 14)
        b = bh_ref[layer]                            # (14, 1)
        z = jnp.dot(w, h, preferred_element_type=jnp.float32) + b
        h = jnp.maximum(z, 0.0).astype(cdt)          # stay in operand dtype for MXU

    # Dropout(p=0.1): identity in eval/inference mode (PyTorch model.eval()).
    # TODO(synk): training-mode dropout would need pltpu.prng_seed /
    # pltpu.prng_random_bits masking scaled by 1/(1-p).

    # Output Linear(14,1): wo (1,14) @ h (14,TB) -> logits (1, TB), lane-dense.
    logits = jnp.dot(wo_ref[...], h, preferred_element_type=jnp.float32) + bo_ref[...]
    o_ref[...] = jax.nn.sigmoid(logits)              # (1, TB), EUP path, f32 out


def deep_model_forward(x, params, *, tb=8192, num_cores=2):
    """x: [B, 14] -> [B, 1] float32 (matches PyTorch forward shape)."""
    cdt = params["wh"].dtype
    x = jnp.asarray(x).astype(cdt)
    B = x.shape[0]

    # Batch tile: multiple of 128 (lane-dense blocks), capped at `tb` and capped
    # so that mid-size batches produce >= num_cores grid steps (v7x megacore).
    tb_cap = _round_up(pl.cdiv(B, num_cores), 128)
    TB = max(128, min(_round_up(tb, 128), tb_cap))
    G = pl.cdiv(B, TB)
    Bp = G * TB

    # Batch onto the lane axis; tail padding fuses into the same transpose copy.
    x_t = jnp.pad(x.T, ((0, 0), (0, Bp - B)))        # (14, Bp)

    out = pl.pallas_call(
        deep_model_kernel,
        out_shape=jax.ShapeDtypeStruct((1, Bp), jnp.float32),
        grid=(G,),
        in_specs=[
            pl.BlockSpec((FEAT, TB), lambda i: (0, i)),           # x tile (14, TB)
            pl.BlockSpec((3, FEAT, FEAT), lambda i: (0, 0, 0)),   # hidden weights [out,in]
            pl.BlockSpec((3, FEAT, 1), lambda i: (0, 0, 0)),      # hidden biases (14,1)
            pl.BlockSpec((1, FEAT), lambda i: (0, 0)),            # output weight [out,in]
            pl.BlockSpec((1, 1), lambda i: (0, 0)),               # output bias
        ],
        out_specs=pl.BlockSpec((1, TB), lambda i: (0, i)),        # lane-dense output
        compiler_params=pltpu.CompilerParams(
            dimension_semantics=("parallel",),    # shard batch grid across TCs (v7x)
        ),
    )(x_t, params["wh"], params["bh"], params["wo"], params["bo"])

    # (1, Bp) -> drop padding -> (B, 1) to match PyTorch output.
    return out.reshape(Bp)[:B].reshape(B, 1).astype(jnp.float32)


def init_params(key):
    """PyTorch nn.Linear default init: U(-1/sqrt(fan_in), 1/sqrt(fan_in))."""
    def linear(key, fan_in, fan_out):
        kw, kb = jax.random.split(key)
        bound = 1.0 / jnp.sqrt(jnp.float32(fan_in))
        # PyTorch layout: weight [out, in]; bias stored as a (out, 1) column.
        w = jax.random.uniform(kw, (fan_out, fan_in), jnp.float32, -bound, bound)
        b = jax.random.uniform(kb, (fan_out, 1), jnp.float32, -bound, bound)
        return w, b

    k1, k2, k3, k4 = jax.random.split(key, 4)
    w1, b1 = linear(k1, FEAT, FEAT)
    w2, b2 = linear(k2, FEAT, FEAT)
    w3, b3 = linear(k3, FEAT, FEAT)
    wo, bo = linear(k4, FEAT, 1)
    return dict(
        wh=jnp.stack([w1, w2, w3]),   # (3, 14, 14) [out, in]
        bh=jnp.stack([b1, b2, b3]),   # (3, 14, 1)
        wo=wo,                        # (1, 14)     [out, in]
        bo=bo,                        # (1, 1)
    )


def reference_forward(x, p):
    h = jnp.asarray(x, jnp.float32)
    for layer in range(3):
        h = jnp.maximum(h @ p["wh"][layer].T + p["bh"][layer].reshape(1, FEAT), 0.0)
    return jax.nn.sigmoid(h @ p["wo"].T + p["bo"].reshape(1, 1))


if __name__ == "__main__":
    key = jax.random.PRNGKey(0)
    kx, kx2, kp = jax.random.split(key, 3)
    params = init_params(kp)

    # Small batch (single padded tile).
    B = 16
    x = jax.random.normal(kx, (B, FEAT), jnp.float32)
    out = jax.block_until_ready(deep_model_forward(x, params))
    ref = reference_forward(x, params)
    assert out.shape == (B, 1)
    assert jnp.allclose(out, ref, atol=1e-5, rtol=1e-5)

    # Multi-tile grid + ragged tail (B=300 -> TB=256, G=2, padded to 512).
    B2 = 300
    x2 = jax.random.normal(kx2, (B2, FEAT), jnp.float32)
    out2 = jax.block_until_ready(deep_model_forward(x2, params))
    ref2 = reference_forward(x2, params)
    assert out2.shape == (B2, 1)
    assert jnp.allclose(out2, ref2, atol=1e-5, rtol=1e-5)

    # Optional bf16 operand path (bf16-native MXU on v6e/v7x), f32 accumulation.
    params_bf16 = jax.tree_util.tree_map(lambda a: a.astype(jnp.bfloat16), params)
    out3 = jax.block_until_ready(deep_model_forward(x2, params_bf16))
    assert out3.shape == (B2, 1)
    assert jnp.allclose(out3, ref2, atol=2e-2, rtol=2e-2)

    print("KERNEL_OK")
</pallas_src>

<mosaic_0001>
module attributes {stable_mosaic.version = 11 : i64} {
  func.func @deep_model_kernel(%arg0: i32, %arg1: memref<14x128xf32, #tpu.memory_space<vmem>>, %arg2: memref<3x14x14xf32, #tpu.memory_space<vmem>>, %arg3: memref<3x14x1xf32, #tpu.memory_space<vmem>>, %arg4: memref<1x14xf32, #tpu.memory_space<vmem>>, %arg5: memref<1x1xf32, #tpu.memory_space<vmem>>, %arg6: memref<1x128xf32, #tpu.memory_space<vmem>>) attributes {dimension_semantics = [#tpu.dimension_semantics<parallel>], iteration_bounds = array<i64: 1>, scalar_prefetch = 0 : i64, scratch_operands = 0 : i64, tpu.core_type = #tpu.core_type<tc>, window_params = [{transform_indices = @transform_0, window_bounds = array<i64: 14, 128>}, {pipeline_mode = #tpu.pipeline_mode<synchronous>, transform_indices = @transform_1, window_bounds = array<i64: 3, 14, 14>}, {pipeline_mode = #tpu.pipeline_mode<synchronous>, transform_indices = @transform_2, window_bounds = array<i64: 3, 14, 1>}, {pipeline_mode = #tpu.pipeline_mode<synchronous>, transform_indices = @transform_3, window_bounds = array<i64: 1, 14>}, {pipeline_mode = #tpu.pipeline_mode<synchronous>, transform_indices = @transform_4, window_bounds = array<i64: 1, 1>}, {transform_indices = @transform_5, window_bounds = array<i64: 1, 128>}]} {
    %c0 = arith.constant 0 : index
    %c0_0 = arith.constant 0 : index
    %0 = vector.load %arg1[%c0, %c0_0] : memref<14x128xf32, #tpu.memory_space<vmem>>, vector<14x128xf32>
    %c0_1 = arith.constant 0 : index
    %c0_2 = arith.constant 0 : index
    %c0_3 = arith.constant 0 : index
    %1 = vector.load %arg2[%c0_1, %c0_2, %c0_3] : memref<3x14x14xf32, #tpu.memory_space<vmem>>, vector<1x14x14xf32>
    %2 = vector.shape_cast %1 : vector<1x14x14xf32> to vector<14x14xf32>
    %c0_4 = arith.constant 0 : index
    %c0_5 = arith.constant 0 : index
    %c0_6 = arith.constant 0 : index
    %3 = vector.load %arg3[%c0_4, %c0_5, %c0_6] : memref<3x14x1xf32, #tpu.memory_space<vmem>>, vector<1x14x1xf32>
    %4 = vector.shape_cast %3 : vector<1x14x1xf32> to vector<14x1xf32>
    %cst = arith.constant dense<0.000000e+00> : vector<14x128xf32>
    %5 = tpu.matmul %2, %0, %cst {dimension_numbers = #tpu.dot_dimension_numbers<[1], [0], [0], [1], [0, 0, 1, 1], [], []>} : vector<14x14xf32>, vector<14x128xf32>, vector<14x128xf32> -> vector<14x128xf32>
    %6 = vector.broadcast %4 : vector<14x1xf32> to vector<14x128xf32>
    %7 = arith.addf %5, %6 : vector<14x128xf32>
    %cst_7 = arith.constant 0.000000e+00 : f32
    %8 = vector.broadcast %cst_7 : f32 to vector<14x128xf32>
    %9 = arith.maximumf %7, %8 : vector<14x128xf32>
    %c1 = arith.constant 1 : index
    %c0_8 = arith.constant 0 : index
    %c0_9 = arith.constant 0 : index
    %10 = vector.load %arg2[%c1, %c0_8, %c0_9] : memref<3x14x14xf32, #tpu.memory_space<vmem>>, vector<1x14x14xf32>
    %11 = vector.shape_cast %10 : vector<1x14x14xf32> to vector<14x14xf32>
    %c1_10 = arith.constant 1 : index
    %c0_11 = arith.constant 0 : index
    %c0_12 = arith.constant 0 : index
    %12 = vector.load %arg3[%c1_10, %c0_11, %c0_12] : memref<3x14x1xf32, #tpu.memory_space<vmem>>, vector<1x14x1xf32>
    %13 = vector.shape_cast %12 : vector<1x14x1xf32> to vector<14x1xf32>
    %cst_13 = arith.constant dense<0.000000e+00> : vector<14x128xf32>
    %14 = tpu.matmul %11, %9, %cst_13 {dimension_numbers = #tpu.dot_dimension_numbers<[1], [0], [0], [1], [0, 0, 1, 1], [], []>} : vector<14x14xf32>, vector<14x128xf32>, vector<14x128xf32> -> vector<14x128xf32>
    %15 = vector.broadcast %13 : vector<14x1xf32> to vector<14x128xf32>
    %16 = arith.addf %14, %15 : vector<14x128xf32>
    %cst_14 = arith.constant 0.000000e+00 : f32
    %17 = vector.broadcast %cst_14 : f32 to vector<14x128xf32>
    %18 = arith.maximumf %16, %17 : vector<14x128xf32>
    %c2 = arith.constant 2 : index
    %c0_15 = arith.constant 0 : index
    %c0_16 = arith.constant 0 : index
    %19 = vector.load %arg2[%c2, %c0_15, %c0_16] : memref<3x14x14xf32, #tpu.memory_space<vmem>>, vector<1x14x14xf32>
    %20 = vector.shape_cast %19 : vector<1x14x14xf32> to vector<14x14xf32>
    %c2_17 = arith.constant 2 : index
    %c0_18 = arith.constant 0 : index
    %c0_19 = arith.constant 0 : index
    %21 = vector.load %arg3[%c2_17, %c0_18, %c0_19] : memref<3x14x1xf32, #tpu.memory_space<vmem>>, vector<1x14x1xf32>
    %22 = vector.shape_cast %21 : vector<1x14x1xf32> to vector<14x1xf32>
    %cst_20 = arith.constant dense<0.000000e+00> : vector<14x128xf32>
    %23 = tpu.matmul %20, %18, %cst_20 {dimension_numbers = #tpu.dot_dimension_numbers<[1], [0], [0], [1], [0, 0, 1, 1], [], []>} : vector<14x14xf32>, vector<14x128xf32>, vector<14x128xf32> -> vector<14x128xf32>
    %24 = vector.broadcast %22 : vector<14x1xf32> to vector<14x128xf32>
    %25 = arith.addf %23, %24 : vector<14x128xf32>
    %cst_21 = arith.constant 0.000000e+00 : f32
    %26 = vector.broadcast %cst_21 : f32 to vector<14x128xf32>
    %27 = arith.maximumf %25, %26 : vector<14x128xf32>
    %c0_22 = arith.constant 0 : index
    %c0_23 = arith.constant 0 : index
    %28 = vector.load %arg4[%c0_22, %c0_23] : memref<1x14xf32, #tpu.memory_space<vmem>>, vector<1x14xf32>
    %cst_24 = arith.constant dense<0.000000e+00> : vector<1x128xf32>
    %29 = tpu.matmul %28, %27, %cst_24 {dimension_numbers = #tpu.dot_dimension_numbers<[1], [0], [0], [1], [0, 0, 1, 1], [], []>} : vector<1x14xf32>, vector<14x128xf32>, vector<1x128xf32> -> vector<1x128xf32>
    %c0_25 = arith.constant 0 : index
    %c0_26 = arith.constant 0 : index
    %30 = vector.load %arg5[%c0_25, %c0_26] : memref<1x1xf32, #tpu.memory_space<vmem>>, vector<1x1xf32>
    %31 = vector.broadcast %30 : vector<1x1xf32> to vector<1x128xf32>
    %32 = arith.addf %29, %31 : vector<1x128xf32>
    %33 = arith.negf %32 : vector<1x128xf32>
    %34 = math.exp %33 : vector<1x128xf32>
    %cst_27 = arith.constant 1.000000e+00 : f32
    %35 = vector.broadcast %cst_27 : f32 to vector<1x128xf32>
    %36 = arith.addf %35, %34 : vector<1x128xf32>
    %37 = arith.divf %35, %36 : vector<1x128xf32>
    %c0_28 = arith.constant 0 : index
    %c0_29 = arith.constant 0 : index
    %38 = vector.load %arg6[%c0_28, %c0_29] : memref<1x128xf32, #tpu.memory_space<vmem>>, vector<1x128xf32>
    tpu.vector_store %arg6[%c0_28, %c0_29], %37 {strides = array<i32>} : memref<1x128xf32, #tpu.memory_space<vmem>>, vector<1x128xf32>,
    return
  }
  func.func @transform_0(%arg0: i32) -> (i32, i32) {
    %c0_i32 = arith.constant 0 : i32
    %c0_i32_0 = arith.constant 0 : i32
    return %c0_i32, %arg0 : i32, i32
  }
  func.func @transform_1(%arg0: i32) -> (i32, i32, i32) {
    %c0_i32 = arith.constant 0 : i32
    %c0_i32_0 = arith.constant 0 : i32
    %c0_i32_1 = arith.constant 0 : i32
    %c0_i32_2 = arith.constant 0 : i32
    return %c0_i32, %c0_i32_0, %c0_i32_1 : i32, i32, i32
  }
  func.func @transform_2(%arg0: i32) -> (i32, i32, i32) {
    %c0_i32 = arith.constant 0 : i32
    %c0_i32_0 = arith.constant 0 : i32
    %c0_i32_1 = arith.constant 0 : i32
    %c0_i32_2 = arith.constant 0 : i32
    return %c0_i32, %c0_i32_0, %c0_i32_1 : i32, i32, i32
  }
  func.func @transform_3(%arg0: i32) -> (i32, i32) {
    %c0_i32 = arith.constant 0 : i32
    %c0_i32_0 = arith.constant 0 : i32
    %c0_i32_1 = arith.constant 0 : i32
    return %c0_i32, %c0_i32_0 : i32, i32
  }
  func.func @transform_4(%arg0: i32) -> (i32, i32) {
    %c0_i32 = arith.constant 0 : i32
    %c0_i32_0 = arith.constant 0 : i32
    %c0_i32_1 = arith.constant 0 : i32
    return %c0_i32, %c0_i32_0 : i32, i32
  }
  func.func @transform_5(%arg0: i32) -> (i32, i32) {
    %c0_i32 = arith.constant 0 : i32
    %c0_i32_0 = arith.constant 0 : i32
    return %c0_i32, %arg0 : i32, i32
  }
}

</mosaic_0001>

<bundles_post_ra>
// kernel: tpu_custom_call.1
= control target key start
LH: loop header
LB: loop body
LE: loop exit
PB: predicated region body
PF: predicated region fallthrough
CT: control target
= control target key end

     0   :  { %s732_s0 = inlined_call_operand.hbm [shape: f32[14,128], index: 0, kind: input, shape index: {}]   ;;  %s733_s1 = inlined_call_operand.vmem [shape: f32[3,14,14], index: 1, kind: input, shape index: {}]   ;;  %s734_s2 = inlined_call_operand.vmem [shape: f32[3,14,1], index: 2, kind: input, shape index: {}]   ;;  %s735_s3 = inlined_call_operand.vmem [shape: f32[1,14], index: 3, kind: input, shape index: {}]   ;;  %s736_s4 = inlined_call_operand.<no memory space> [shape: f32[1,1], index: 4, kind: input, shape index: {}]   ;;  %s737_s5 = inlined_call_operand.hbm [shape: f32[1,128], index: 5, kind: output, shape index: {}]  }
   0x1   :  { %v10_v0 = vstv %s736_s4 }
   0x2   :  { %11 = vst [vmem:[#allocation2] sm:$0x1] %v10_v0 }
   0x3   :  { %12 = vsyncpa [#allocation4], 0 }
   0x4   :  { %13 = vsyncpa [#allocation5], 0  ;;  %s602_s20 = smov [#allocation3]   ;;  %s554_s24 = scalar_lea.hbm %s732_s0, 256 }
   0x5   :  { %s19_s21 = sshll.u32 %s602_s20, 4  ;;  %p555_p0 = scmp.ne.s32.totalorder %s732_s0, %s554_s24  ;;  %s20_s21 = int_to_ptr.vmem [resolvable:$true] %s19_s21 }
   0x6   :  { %p558_p1 = scmp.lt.u32.totalorder %s554_s24, %s732_s0 }
   0x8   :  { %p560_p2 = pnand %p558_p1, %p555_p0 }
   0xa   :  { %563 = shalt.err (!%p560_p2)
}
   0xb   :  { %s564_s4 = scalar_lea.vmem %s20_s21, 256  ;;  %p569_p4 = scmp.lt.s32.totalorder %s20_s21, %s20_s21 }
   0xc   :  { %p565_p3 = scmp.ne.s32.totalorder %s20_s21, %s564_s4  ;;  %p570_p5 = scmp.lt.s32.totalorder %s564_s4, %s564_s4 }
   0xe   :  { %p571_p6 = por %p570_p5, %p569_p4 }
  0x10   :  { %p572_p7 = pnand %p571_p6, %p565_p3 }
  0x12   :  { %575 = shalt.err (!%p572_p7)
}
  0x13   :  { %s603_s29 = smov 128   ;;  %s604_s30 = smov 8  }
  0x14   :  { %25 = dma.hbm_to_vmem [thread:$0]  %s732_s0, 256, %s20_s21, [#allocation4], %s603_s29, %s603_s29, %s604_s30  }
  0x15   :  { %598 = dma.done.wait [#allocation4], 256  }
  0x16   :  { %599 = vsyncadd [#allocation4], 4294967040  ;;  %v605_v1 = vmov 0   ;;  %vm60_vm0 = vcmask 1045504   ;;  %vm53_vm1 = vcmask 113664   ;;  %vm606_vm2 = vmmov 1  }
  0x17   :  { %548 = vset.pattern.permute.xlu0 %v605_v1  ;;  %549 = vset.pattern.permute.xlu1 %v605_v1  ;;  %vm656_vm3 = vmpackc.low %vm60_vm0, %vm606_vm2  ;;  %v37_v3 = vld [vmem:[#allocation3] sm:$0xff]  ;;  %v38_v4 = vld [vmem:[#allocation3 + $0x8] sm:$0x3f]  ;;  %v607_v37 = vmov 0.0|0.0   ;;  %vm608_vm4 = vmmov 0   ;;  %v609_v38 = vmov 0.0   ;;  %v352_v49 = vlaneseq }
  0x18   :  { %v39_v5 = vld [vmem:[%s733_s1] sm:$0xff]  ;;  %v517_v6 = vpack.c.bf16 %v38_v4, %v37_v3  ;;  %v42_v8 = vld [vmem:[%s734_s2 + $0x8] sm:$0x3f]  ;;  %v457_v12 = vld [vmem:[%s733_s1 + $0x10] sm:$0xff]  ;;  %s610_s30 = smov [#allocation6]  }
  0x19   :  { %493 = vmatprep.mubr.msk.f32.mxu0 %vm53_vm1, %v39_v5  ;;  %v41_v7 = vld [vmem:[%s734_s2] sm:$0xff]  ;;  %v40_v9 = vld [vmem:[%s733_s1 + $0x8] sm:$0x3f]  ;;  %500 = vmatprep.mubr.msk.f32.mxu1 %vm53_vm1, %v457_v12  ;;  %v459_v13 = vld [vmem:[%s734_s2 + $0x10] sm:$0xff]  ;;  %v353_v50 = vshrl.u32 %v352_v49, 7  ;;  %s445_s6 = sshll.u32 %s610_s30, 4  ;;  %s446_s6 = int_to_ptr.vmem [resolvable:$true] %s445_s6 }
  0x1a   :  { %45 = vperm.xlu0 %548, %v41_v7   ;;  %519 = vmatprep.subr.msk.bf16.mxu0 %vm656_vm3, %v517_v6  ;;  %v466_v10 = vld [vmem:[%s734_s2 + $0x20] sm:$0xff]  ;;  %v460_v14 = vld [vmem:[%s734_s2 + $0x18] sm:$0x3f]  ;;  %v467_v15 = vld [vmem:[%s734_s2 + $0x28] sm:$0x3f]  ;;  %s580_s7 = scalar_lea.vmem %s446_s6, 32  ;;  %p581_p9 = scmp.lt.s32.totalorder %s446_s6, %s446_s6 }
  0x1b   :  { %522 = vmatpush3.bf16.msk.msra.mxu0 %vm656_vm3, %v517_v6  ;;  %v346_v11 = vld [vmem:[#allocation2] sm:$0x1]  ;;  %149 = vperm.xlu1 %549, %v459_v13   ;;  %v458_v25 = vld [vmem:[%s733_s1 + $0x18] sm:$0x3f]  ;;  %v465_v36 = vld [vmem:[%s733_s1 + $0x28] sm:$0x3f] }
  0x1c   :  { %v464_v26 = vld [vmem:[%s733_s1 + $0x20] sm:$0xff]  ;;  %v354_v51 = vsub.s32 0, %v353_v50 }
  0x1d   :  { %v345_v48 = vld [vmem:[%s735_s3] sm:$0x1]  ;;  %s576_s3 = scalar_lea.vmem %s446_s6, 16 }
  0x1e   :  { %50 = vperm.xlu0 %548, %v42_v8   ;;  %494 = vmatmul.mubr.msk.f32.vlgmr.msra.gmra.mrb[0].mxu0 %vm53_vm1, %v40_v9  ;;  %p577_p8 = scmp.ne.s32.totalorder %s446_s6, %s576_s3  ;;  %p582_p10 = scmp.lt.s32.totalorder %s580_s7, %s576_s3 }
  0x1f   :  { %154 = vperm.xlu1 %549, %v460_v14   ;;  %507 = vmatprep.mubr.msk.f32.mxu0 %vm53_vm1, %v464_v26 }
  0x20   :  { %p583_p11 = por %p582_p10, %p581_p9 }
  0x22   :  { %251 = vperm.xlu0 %548, %v466_v10   ;;  %p584_p12 = pnand %p583_p11, %p577_p8 }
  0x23   :  { %256 = vperm.xlu1 %549, %v467_v15  }
  0x26   :  { %349 = vperm.xlu0 %548, %v346_v11  }
  0x99   :  { %v46_v16 = vpop.permute.xlu0 %45 }
  0x9a   :  { %v150_v27 = vpop.permute.xlu1 %149 }
  0x9d   :  { %v51_v17 = vpop.permute.xlu0 %50 }
  0x9e   :  { %v155_v28 = vpop.permute.xlu1 %154 }
  0xa1   :  { %v252_v41 = vpop.permute.xlu0 %251 }
  0xa2   :  { %v257_v39 = vpop.permute.xlu1 %256 }
  0xa5   :  { %v350_v52 = vpop.permute.xlu0 %349 }
  0xa6   :  { %v355_v53 = vrot.slane %v350_v52, %v354_v51 }
  0xf1   :  { %v495_v18 = vpop.f32.mrb[0].mxu0 }
  0xf2   :  { %v136_v19 = vadd.f32 %v495_v18, %v51_v17  ;;  %v130_v20 = vpop.f32.mrb[1].mxu0 }
  0xf3   :  { %v131_v21 = vadd.f32 %v130_v20, %v46_v16 }
  0xf4   :  { %v140_v22 = vmax.f32 %v136_v19, 0.0 }
  0xf5   :  { %v139_v23 = vmax.f32 %v131_v21, 0.0 }
  0xf7   :  { %v523_v24 = vpack.c.bf16 %v140_v22, %v139_v23 }
  0xf9   :  { %525 = vmatprep.subr.msk.bf16.mxu1 %vm656_vm3, %v523_v24 }
  0xfa   :  { %528 = vmatpush3.bf16.msk.msra.mxu1 %vm656_vm3, %v523_v24 }
  0xfb   :  { %535 = vmatprep.subr.bf16.mxu1 %v607_v37 }
  0xfd   :  { %501 = vmatmul.mubr.msk.f32.vlgmr.msra.gmra.mrb[0].mxu1 %vm53_vm1, %v458_v25 }
  0xfe   :  { %514 = vmatprep.mubr.msk.f32.mxu1 %vm608_vm4, %v609_v38 }
 0x1d0   :  { %v502_v29 = vpop.f32.mrb[0].mxu1 }
 0x1d1   :  { %v238_v30 = vadd.f32 %v502_v29, %v155_v28  ;;  %v232_v31 = vpop.f32.mrb[1].mxu1 }
 0x1d2   :  { %v233_v32 = vadd.f32 %v232_v31, %v150_v27 }
 0x1d3   :  { %v242_v33 = vmax.f32 %v238_v30, 0.0 }
 0x1d4   :  { %v241_v34 = vmax.f32 %v233_v32, 0.0 }
 0x1d6   :  { %v529_v35 = vpack.c.bf16 %v242_v33, %v241_v34 }
 0x1d8   :  { %531 = vmatprep.subr.msk.bf16.mxu0 %vm656_vm3, %v529_v35 }
 0x1d9   :  { %534 = vmatpush3.bf16.msk.msra.mxu0 %vm656_vm3, %v529_v35 }
 0x1dc   :  { %508 = vmatmul.mubr.msk.f32.vlgmr.msra.gmra.mrb[2].mxu0 %vm53_vm1, %v465_v36 }
 0x2af   :  { %v509_v40 = vpop.f32.mrb[2].mxu0 }
 0x2b0   :  { %v340_v42 = vadd.f32 %v509_v40, %v257_v39  ;;  %v334_v43 = vpop.f32.mrb[3].mxu0 }
 0x2b1   :  { %v335_v44 = vadd.f32 %v334_v43, %v252_v41 }
 0x2b2   :  { %v344_v45 = vmax.f32 %v340_v42, 0.0 }
 0x2b3   :  { %v343_v46 = vmax.f32 %v335_v44, 0.0 }
 0x2b5   :  { %v536_v47 = vpack.c.bf16 %v344_v45, %v343_v46 }
 0x2b7   :  { %538 = vmatpush3.bf16.msk.msra.mxu1 %vm656_vm3, %v536_v47 }
 0x2ba   :  { %515 = vmatmul.mubr.msk.f32.vlgmr.msra.gmra.mrb[2].mxu1 %vm53_vm1, %v345_v48 }
 0x38d   :  { %v428_v54 = vpop.f32.mrb[2].mxu1 }
 0x38e   :  { %v429_v55 = vadd.f32 %v428_v54, %v355_v53  ;;  %v516_v56 = vpop.f32.mrb[3].mxu1 }
 0x390   :  { %v473_v57 = vmul.f32 -1.442695, %v429_v55 }
 0x392   :  { %550 = vpow2.f32 %v473_v57 }
 0x39c   :  { %v551_v58 = vpop.eup %550 }
 0x39d   :  { %v435_v59 = vadd.f32 1.0, %v551_v58 }
 0x39f   :  { %552 = vrcp.f32 %v435_v59 }
 0x3a9   :  { %v553_v60 = vpop.eup %552 }
 0x3aa   :  { %438 = vst [vmem:[#allocation6] sm:$0x1] %v553_v60 }
 0x3ab   :  { %587 = shalt.err (!%p584_p12)
}
 0x3ac   :  { %s588_s0 = scalar_lea.hbm %s737_s5, 16 }
 0x3ad   :  { %p589_p13 = scmp.ne.s32.totalorder %s737_s5, %s588_s0  ;;  %p592_p0 = scmp.lt.u32.totalorder %s588_s0, %s737_s5 }
 0x3af   :  { %p594_p1 = pnand %p592_p0, %p589_p13 }
 0x3b1   :  { %597 = shalt.err (!%p594_p1)
}
 0x3b2   :  { %448 = dma.vmem_to_hbm [thread:$0]  %s446_s6, 16, %s737_s5, [#allocation5]  }
 0x3b3   :  { %600 = dma.done.wait [#allocation5], 16  }
 0x3b4   :  { %601 = vsyncadd [#allocation5], 4294967280 }
 0x3b5   :  { %452 = vsyncpa [#allocation4], 1 }
 0x3b6   :  { %453 = vsyncpa [#allocation5], 1 }

</bundles_post_ra>
